<compile_context>
chip_gen: v6e
topology: v6e:2x2x1
jax: 0.10.0
libtpu: 0.0.40
codegen_flags: <defaults>
</compile_context>

<pallas_src>
import functools
from typing import NamedTuple

import jax
import jax.numpy as jnp
from jax.experimental import pallas as pl
from jax.experimental.pallas import tpu as pltpu


def _round_up(x, m):
    return (x + m - 1) // m * m


def _vmem_budget_bytes():
    """Usable VMEM budget with compiler headroom (generation-aware)."""
    cap = 64 << 20
    try:
        cap = int(pltpu.get_tpu_info().vmem_capacity_bytes)
    except Exception:
        pass
    # 75% of physical capacity (leaves scratch headroom on v7x's 64 MiB),
    # capped at ~110 MiB on 128 MiB parts.
    return min(int(cap * 0.75), 110 << 20)


def _choose_batch_tile(batch, cap):
    """Pick a sublane-multiple batch tile that minimizes padding under `cap`."""
    cap = max(8, (cap // 8) * 8)
    tiles = -(-batch // cap)                      # ceil
    tb = _round_up(-(-batch // tiles), 8)         # spread batch evenly
    tb = min(tb, cap)
    return tb, tiles * tb                         # (tile, padded batch)


# ----------------------------- kernels --------------------------------------


def _fused_kernel(x_ref, w_ref, b_ref, wf_ref, bf_ref, o_ref, *, num_layers):
    """All layers fused in one grid step (small models, weights VMEM-resident).

    x_ref  : (TB, H)     input activations (compute_dtype)
    w_ref  : (L, H, H)   full weight stack (compute_dtype), resident
    b_ref  : (L, 1, H)   biases (f32)
    wf_ref : (1, H)      final projection weight row (f32)
    bf_ref : (1, 1)      final projection bias (f32)
    o_ref  : (TB, 1)     output logits (f32)
    """
    h = x_ref[...]
    for l in range(num_layers):
        z = jnp.dot(h.astype(w_ref.dtype), w_ref[l],
                    preferred_element_type=jnp.float32) + b_ref[l]
        h = jnp.maximum(z, 0.0)                   # f32 epilogue
    # Final Linear(H, 1) as VPU multiply + cross-lane (XLU) reduction,
    # avoiding an N=1 MXU pass.
    h = h.astype(jnp.float32)
    logits = jnp.sum(h * wf_ref[...], axis=-1, keepdims=True) + bf_ref[...]
    o_ref[...] = logits.astype(o_ref.dtype)


def _streamed_kernel(x_ref, w_ref, b_ref, wf_ref, bf_ref, o_ref, h_ref):
    """One grid step = one (batch tile, layer) pair; weights streamed per layer.

    h_ref : (TB, H) activation carry in compute_dtype (VMEM scratch).
    """
    l = pl.program_id(1)

    @pl.when(l == 0)
    def _():
        h_ref[...] = x_ref[...].astype(h_ref.dtype)

    z = jnp.dot(h_ref[...].astype(w_ref.dtype), w_ref[0],
                preferred_element_type=jnp.float32) + b_ref[0]
    h = jnp.maximum(z, 0.0)                       # f32
    h_ref[...] = h.astype(h_ref.dtype)

    @pl.when(l == pl.num_programs(1) - 1)
    def _():
        logits = jnp.sum(h * wf_ref[...], axis=-1, keepdims=True) + bf_ref[...]
        o_ref[...] = logits.astype(o_ref.dtype)


def _head_only_kernel(x_ref, wf_ref, bf_ref, o_ref):
    """num_layers == 0 path: only the final Linear(H, 1)."""
    h = x_ref[...].astype(jnp.float32)
    logits = jnp.sum(h * wf_ref[...], axis=-1, keepdims=True) + bf_ref[...]
    o_ref[...] = logits.astype(o_ref.dtype)


# ----------------------------- host-side API ---------------------------------


class PackedParams(NamedTuple):
    w: jax.Array          # (L, h_pad, h_pad) compute_dtype, x @ W orientation
    b: jax.Array          # (L, 1, h_pad) f32
    wf: jax.Array         # (1, h_pad) f32
    bf: jax.Array         # (1, 1) f32
    hidden: int
    h_pad: int
    num_layers: int


def prepack_params(w_stack, b_stack, w_final, b_final, *,
                   compute_dtype=jnp.bfloat16):
    """One-time padding / dtype packing of the parameters (hoisted out of forward)."""
    num_layers = w_stack.shape[0]
    hidden = w_final.shape[0]
    h_pad = _round_up(hidden, 128)                # lane axis

    if num_layers > 0:
        wp = jnp.zeros((num_layers, h_pad, h_pad), compute_dtype).at[
            :, :hidden, :hidden].set(w_stack.astype(compute_dtype))
        bp = jnp.zeros((num_layers, 1, h_pad), jnp.float32).at[
            :, :, :hidden].set(b_stack.astype(jnp.float32))
    else:
        wp = jnp.zeros((0, h_pad, h_pad), compute_dtype)
        bp = jnp.zeros((0, 1, h_pad), jnp.float32)

    wfp = jnp.zeros((1, h_pad), jnp.float32).at[0, :hidden].set(
        w_final[:, 0].astype(jnp.float32))
    bfp = jnp.asarray(b_final, jnp.float32).reshape(1, 1)
    return PackedParams(wp, bp, wfp, bfp, int(hidden), int(h_pad), int(num_layers))


def language_detector_forward(x, params: PackedParams, *,
                              max_batch_tile=768, allow_fused=True):
    """LanguageDetector.forward (eval mode) via fused Pallas kernels.

    x : (B, H) f32.  Returns (B, 1) f32 logits.
    """
    batch, hidden = x.shape
    assert hidden == params.hidden, (hidden, params.hidden)
    h_pad, num_layers = params.h_pad, params.num_layers
    compute_dtype = params.w.dtype
    w_bytes = jnp.dtype(compute_dtype).itemsize

    budget = _vmem_budget_bytes()

    # ---- num_layers == 0: final projection only -----------------------------
    if num_layers == 0:
        tb, b_pad = _choose_batch_tile(batch, min(max_batch_tile, 4096))
        xp = jnp.zeros((b_pad, h_pad), jnp.float32).at[:batch, :hidden].set(
            x.astype(jnp.float32))
        out = pl.pallas_call(
            _head_only_kernel,
            out_shape=jax.ShapeDtypeStruct((b_pad, 1), jnp.float32),
            grid_spec=pltpu.PrefetchScalarGridSpec(
                num_scalar_prefetch=0,
                grid=(b_pad // tb,),
                in_specs=[
                    pl.BlockSpec((tb, h_pad), lambda i: (i, 0)),   # x
                    pl.BlockSpec((1, h_pad), lambda i: (0, 0)),    # w_final
                    pl.BlockSpec((1, 1), lambda i: (0, 0)),        # b_final
                ],
                out_specs=pl.BlockSpec((tb, 1), lambda i: (i, 0)),
            ),
            compiler_params=pltpu.CompilerParams(
                dimension_semantics=("parallel",),
                vmem_limit_bytes=min(budget, 32 << 20)),
        )(xp, params.wf, params.bf)
        return out[:batch]

    # ---- plan: fused (weights resident) vs streamed (one layer / grid step) --
    stack_bytes = (num_layers * h_pad * h_pad * w_bytes
                   + num_layers * 8 * h_pad * 4)
    use_fused = allow_fused and (2 * stack_bytes <= budget // 3)

    x_bytes = w_bytes                              # activations in compute_dtype
    if use_fused:
        fixed = 2 * stack_bytes + 2 * 8 * h_pad * 4 + 2 * 8 * 128 * 4
        per_row = 2 * h_pad * x_bytes + 2 * h_pad * 4 + 2 * 128 * 4
    else:
        fixed = (2 * (h_pad * h_pad * w_bytes + 8 * h_pad * 4)
                 + 2 * 8 * h_pad * 4 + 2 * 8 * 128 * 4)
        per_row = (2 * h_pad * x_bytes + h_pad * w_bytes
                   + h_pad * 4 + 2 * 128 * 4)

    tb_vmem_cap = max(8, int((budget * 0.85 - fixed) // max(per_row, 1)) // 8 * 8)
    tb, b_pad = _choose_batch_tile(batch, min(max_batch_tile, tb_vmem_cap))

    est = fixed + tb * per_row
    vmem_limit = int(min(budget, max(est * 3 // 2 + (4 << 20), 16 << 20)))

    xp = jnp.zeros((b_pad, h_pad), compute_dtype).at[:batch, :hidden].set(
        x.astype(compute_dtype))

    if use_fused:
        out = pl.pallas_call(
            functools.partial(_fused_kernel, num_layers=num_layers),
            out_shape=jax.ShapeDtypeStruct((b_pad, 1), jnp.float32),
            grid_spec=pltpu.PrefetchScalarGridSpec(
                num_scalar_prefetch=0,
                grid=(b_pad // tb,),
                in_specs=[
                    pl.BlockSpec((tb, h_pad), lambda i: (i, 0)),              # x
                    pl.BlockSpec((num_layers, h_pad, h_pad),
                                 lambda i: (0, 0, 0)),                        # W stack
                    pl.BlockSpec((num_layers, 1, h_pad), lambda i: (0, 0, 0)),  # b stack
                    pl.BlockSpec((1, h_pad), lambda i: (0, 0)),               # w_final
                    pl.BlockSpec((1, 1), lambda i: (0, 0)),                   # b_final
                ],
                out_specs=pl.BlockSpec((tb, 1), lambda i: (i, 0)),
            ),
            compiler_params=pltpu.CompilerParams(
                dimension_semantics=("parallel",),
                vmem_limit_bytes=vmem_limit),
        )(xp, params.w, params.b, params.wf, params.bf)
        return out[:batch]

    # Streamed path: batch axis parallel (megacore), layer axis arbitrary,
    # activations carried across the layer axis in a compute_dtype scratch.
    out = pl.pallas_call(
        _streamed_kernel,
        out_shape=jax.ShapeDtypeStruct((b_pad, 1), jnp.float32),
        grid_spec=pltpu.PrefetchScalarGridSpec(
            num_scalar_prefetch=0,
            grid=(b_pad // tb, num_layers),
            in_specs=[
                pl.BlockSpec((tb, h_pad), lambda i, l: (i, 0)),           # x
                pl.BlockSpec((1, h_pad, h_pad), lambda i, l: (l, 0, 0)),  # W_l
                pl.BlockSpec((1, 1, h_pad), lambda i, l: (l, 0, 0)),      # b_l
                pl.BlockSpec((1, h_pad), lambda i, l: (0, 0)),            # w_final
                pl.BlockSpec((1, 1), lambda i, l: (0, 0)),                # b_final
            ],
            out_specs=pl.BlockSpec((tb, 1), lambda i, l: (i, 0)),
            scratch_shapes=[pltpu.VMEM((tb, h_pad), compute_dtype)],
        ),
        compiler_params=pltpu.CompilerParams(
            dimension_semantics=("parallel", "arbitrary"),
            vmem_limit_bytes=vmem_limit),
    )(xp, params.w, params.b, params.wf, params.bf)
    return out[:batch]


# ----------------------------- reference & test -----------------------------


def init_params(key, num_layers, hidden_size):
    """Deterministic PyTorch-style (uniform +/- 1/sqrt(fan_in)) init in JAX."""
    keys = jax.random.split(key, 2 * num_layers + 2)
    bound = 1.0 / jnp.sqrt(hidden_size)

    ws, bs = [], []
    for i in range(num_layers):
        # PyTorch Linear weight is (out, in); we store transposed (in, out)
        # so the kernel can do x @ W directly.
        w = jax.random.uniform(keys[2 * i], (hidden_size, hidden_size),
                               minval=-bound, maxval=bound, dtype=jnp.float32)
        b = jax.random.uniform(keys[2 * i + 1], (1, hidden_size),
                               minval=-bound, maxval=bound, dtype=jnp.float32)
        ws.append(w)
        bs.append(b)

    w_stack = (jnp.stack(ws, axis=0) if num_layers > 0
               else jnp.zeros((0, hidden_size, hidden_size), jnp.float32))
    b_stack = (jnp.stack(bs, axis=0) if num_layers > 0
               else jnp.zeros((0, 1, hidden_size), jnp.float32))

    w_final = jax.random.uniform(keys[-2], (hidden_size, 1),
                                 minval=-bound, maxval=bound, dtype=jnp.float32)
    b_final = jax.random.uniform(keys[-1], (1, 1),
                                 minval=-bound, maxval=bound, dtype=jnp.float32)
    return w_stack, b_stack, w_final, b_final


def reference_forward(x, w_stack, b_stack, w_final, b_final):
    """Pure-JAX reference of LanguageDetector.forward (eval mode), f32 precision."""
    h = x
    for i in range(w_stack.shape[0]):
        h = jnp.maximum(
            jnp.dot(h, w_stack[i], precision=jax.lax.Precision.HIGHEST)
            + b_stack[i], 0.0)
    return jnp.dot(h, w_final, precision=jax.lax.Precision.HIGHEST) + b_final


if __name__ == "__main__":
    num_layers, hidden_size, batch = 2, 32, 8

    key = jax.random.PRNGKey(0)
    key_x, key_p, key_x2, key_p2 = jax.random.split(key, 4)

    x = jax.random.normal(key_x, (batch, hidden_size), dtype=jnp.float32)
    w_stack, b_stack, w_final, b_final = init_params(key_p, num_layers, hidden_size)
    ref = reference_forward(x, w_stack, b_stack, w_final, b_final)

    # f32-weight path: tight check.
    p_f32 = prepack_params(w_stack, b_stack, w_final, b_final,
                           compute_dtype=jnp.float32)
    out = jax.block_until_ready(language_detector_forward(x, p_f32))
    assert out.shape == (batch, 1), out.shape
    assert jnp.allclose(out, ref, atol=1e-5, rtol=1e-5), (out, ref)

    # Default path (bf16 weights, f32 accumulation): looser tolerance.
    p_bf16 = prepack_params(w_stack, b_stack, w_final, b_final)
    out_bf16 = jax.block_until_ready(language_detector_forward(x, p_bf16))
    assert jnp.allclose(out_bf16, ref, atol=5e-2, rtol=5e-2), (out_bf16, ref)

    # num_layers == 0 path (final projection only).
    w0 = jnp.zeros((0, hidden_size, hidden_size), jnp.float32)
    b0 = jnp.zeros((0, 1, hidden_size), jnp.float32)
    p0 = prepack_params(w0, b0, w_final, b_final, compute_dtype=jnp.float32)
    out0 = jax.block_until_ready(language_detector_forward(x, p0))
    ref0 = reference_forward(x, w0, b0, w_final, b_final)
    assert jnp.allclose(out0, ref0, atol=1e-5, rtol=1e-5), (out0, ref0)

    # Larger check: non-multiple batch + hidden (fused path, minimal padding).
    batch2, hidden2, layers2 = 300, 96, 3
    x2 = jax.random.normal(key_x2, (batch2, hidden2), dtype=jnp.float32)
    w2, b2, wf2, bf2 = init_params(key_p2, layers2, hidden2)
    p2 = prepack_params(w2, b2, wf2, bf2, compute_dtype=jnp.float32)
    ref2 = reference_forward(x2, w2, b2, wf2, bf2)

    out2 = jax.block_until_ready(language_detector_forward(x2, p2))
    assert out2.shape == (batch2, 1), out2.shape
    assert jnp.allclose(out2, ref2, atol=1e-4, rtol=1e-4), \
        float(jnp.max(jnp.abs(out2 - ref2)))

    # Multi-tile batch grid (3 tiles of 104 rows).
    out2m = jax.block_until_ready(
        language_detector_forward(x2, p2, max_batch_tile=128))
    assert jnp.allclose(out2m, ref2, atol=1e-4, rtol=1e-4), \
        float(jnp.max(jnp.abs(out2m - ref2)))

    # Layer-streamed path (weights streamed per grid step).
    out2s = jax.block_until_ready(
        language_detector_forward(x2, p2, allow_fused=False))
    assert jnp.allclose(out2s, ref2, atol=1e-4, rtol=1e-4), \
        float(jnp.max(jnp.abs(out2s - ref2)))

    print("KERNEL_OK")
</pallas_src>

<mosaic_0001>
module attributes {stable_mosaic.version = 11 : i64} {
  func.func @_fused_kernel(%arg0: i32, %arg1: memref<8x128xf32, #tpu.memory_space<vmem>>, %arg2: memref<2x128x128xf32, #tpu.memory_space<vmem>>, %arg3: memref<2x1x128xf32, #tpu.memory_space<vmem>>, %arg4: memref<1x128xf32, #tpu.memory_space<vmem>>, %arg5: memref<1x1xf32, #tpu.memory_space<vmem>>, %arg6: memref<8x1xf32, #tpu.memory_space<vmem>>) attributes {dimension_semantics = [#tpu.dimension_semantics<parallel>], iteration_bounds = array<i64: 1>, scalar_prefetch = 0 : i64, scratch_operands = 0 : i64, tpu.core_type = #tpu.core_type<tc>, window_params = [{transform_indices = @transform_0, window_bounds = array<i64: 8, 128>}, {pipeline_mode = #tpu.pipeline_mode<synchronous>, transform_indices = @transform_1, window_bounds = array<i64: 2, 128, 128>}, {pipeline_mode = #tpu.pipeline_mode<synchronous>, transform_indices = @transform_2, window_bounds = array<i64: 2, 1, 128>}, {pipeline_mode = #tpu.pipeline_mode<synchronous>, transform_indices = @transform_3, window_bounds = array<i64: 1, 128>}, {pipeline_mode = #tpu.pipeline_mode<synchronous>, transform_indices = @transform_4, window_bounds = array<i64: 1, 1>}, {transform_indices = @transform_5, window_bounds = array<i64: 8, 1>}]} {
    %c0 = arith.constant 0 : index
    %c0_0 = arith.constant 0 : index
    %0 = vector.load %arg1[%c0, %c0_0] : memref<8x128xf32, #tpu.memory_space<vmem>>, vector<8x128xf32>
    %c0_1 = arith.constant 0 : index
    %c0_2 = arith.constant 0 : index
    %c0_3 = arith.constant 0 : index
    %1 = vector.load %arg2[%c0_1, %c0_2, %c0_3] : memref<2x128x128xf32, #tpu.memory_space<vmem>>, vector<1x128x128xf32>
    %2 = vector.shape_cast %1 : vector<1x128x128xf32> to vector<128x128xf32>
    %cst = arith.constant dense<0.000000e+00> : vector<8x128xf32>
    %3 = tpu.matmul %0, %2, %cst {dimension_numbers = #tpu.dot_dimension_numbers<[1], [0], [0], [1], [0, 0, 1, 1], [], []>} : vector<8x128xf32>, vector<128x128xf32>, vector<8x128xf32> -> vector<8x128xf32>
    %c0_4 = arith.constant 0 : index
    %c0_5 = arith.constant 0 : index
    %c0_6 = arith.constant 0 : index
    %4 = vector.load %arg3[%c0_4, %c0_5, %c0_6] : memref<2x1x128xf32, #tpu.memory_space<vmem>>, vector<1x1x128xf32>
    %5 = vector.shape_cast %4 : vector<1x1x128xf32> to vector<1x128xf32>
    %6 = vector.broadcast %5 : vector<1x128xf32> to vector<8x128xf32>
    %7 = arith.addf %3, %6 : vector<8x128xf32>
    %cst_7 = arith.constant 0.000000e+00 : f32
    %8 = vector.broadcast %cst_7 : f32 to vector<8x128xf32>
    %9 = arith.maximumf %7, %8 : vector<8x128xf32>
    %c1 = arith.constant 1 : index
    %c0_8 = arith.constant 0 : index
    %c0_9 = arith.constant 0 : index
    %10 = vector.load %arg2[%c1, %c0_8, %c0_9] : memref<2x128x128xf32, #tpu.memory_space<vmem>>, vector<1x128x128xf32>
    %11 = vector.shape_cast %10 : vector<1x128x128xf32> to vector<128x128xf32>
    %cst_10 = arith.constant dense<0.000000e+00> : vector<8x128xf32>
    %12 = tpu.matmul %9, %11, %cst_10 {dimension_numbers = #tpu.dot_dimension_numbers<[1], [0], [0], [1], [0, 0, 1, 1], [], []>} : vector<8x128xf32>, vector<128x128xf32>, vector<8x128xf32> -> vector<8x128xf32>
    %c1_11 = arith.constant 1 : index
    %c0_12 = arith.constant 0 : index
    %c0_13 = arith.constant 0 : index
    %13 = vector.load %arg3[%c1_11, %c0_12, %c0_13] : memref<2x1x128xf32, #tpu.memory_space<vmem>>, vector<1x1x128xf32>
    %14 = vector.shape_cast %13 : vector<1x1x128xf32> to vector<1x128xf32>
    %15 = vector.broadcast %14 : vector<1x128xf32> to vector<8x128xf32>
    %16 = arith.addf %12, %15 : vector<8x128xf32>
    %cst_14 = arith.constant 0.000000e+00 : f32
    %17 = vector.broadcast %cst_14 : f32 to vector<8x128xf32>
    %18 = arith.maximumf %16, %17 : vector<8x128xf32>
    %c0_15 = arith.constant 0 : index
    %c0_16 = arith.constant 0 : index
    %19 = vector.load %arg4[%c0_15, %c0_16] : memref<1x128xf32, #tpu.memory_space<vmem>>, vector<1x128xf32>
    %20 = vector.broadcast %19 : vector<1x128xf32> to vector<8x128xf32>
    %21 = arith.mulf %18, %20 : vector<8x128xf32>
    %cst_17 = arith.constant dense<0.000000e+00> : vector<8xf32>
    %22 = vector.multi_reduction <add>, %21, %cst_17 [1] : vector<8x128xf32> to vector<8xf32>
    %23 = vector.shape_cast %22 : vector<8xf32> to vector<8x1xf32>
    %c0_18 = arith.constant 0 : index
    %c0_19 = arith.constant 0 : index
    %24 = vector.load %arg5[%c0_18, %c0_19] : memref<1x1xf32, #tpu.memory_space<vmem>>, vector<1x1xf32>
    %25 = vector.broadcast %24 : vector<1x1xf32> to vector<8x1xf32>
    %26 = arith.addf %23, %25 : vector<8x1xf32>
    %c0_20 = arith.constant 0 : index
    %c0_21 = arith.constant 0 : index
    %27 = vector.load %arg6[%c0_20, %c0_21] : memref<8x1xf32, #tpu.memory_space<vmem>>, vector<8x1xf32>
    tpu.vector_store %arg6[%c0_20, %c0_21], %26 {strides = array<i32>} : memref<8x1xf32, #tpu.memory_space<vmem>>, vector<8x1xf32>,
    return
  }
  func.func @transform_0(%arg0: i32) -> (i32, i32) {
    %c0_i32 = arith.constant 0 : i32
    %c0_i32_0 = arith.constant 0 : i32
    return %arg0, %c0_i32 : i32, i32
  }
  func.func @transform_1(%arg0: i32) -> (i32, i32, i32) {
    %c0_i32 = arith.constant 0 : i32
    %c0_i32_0 = arith.constant 0 : i32
    %c0_i32_1 = arith.constant 0 : i32
    %c0_i32_2 = arith.constant 0 : i32
    return %c0_i32, %c0_i32_0, %c0_i32_1 : i32, i32, i32
  }
  func.func @transform_2(%arg0: i32) -> (i32, i32, i32) {
    %c0_i32 = arith.constant 0 : i32
    %c0_i32_0 = arith.constant 0 : i32
    %c0_i32_1 = arith.constant 0 : i32
    %c0_i32_2 = arith.constant 0 : i32
    return %c0_i32, %c0_i32_0, %c0_i32_1 : i32, i32, i32
  }
  func.func @transform_3(%arg0: i32) -> (i32, i32) {
    %c0_i32 = arith.constant 0 : i32
    %c0_i32_0 = arith.constant 0 : i32
    %c0_i32_1 = arith.constant 0 : i32
    return %c0_i32, %c0_i32_0 : i32, i32
  }
  func.func @transform_4(%arg0: i32) -> (i32, i32) {
    %c0_i32 = arith.constant 0 : i32
    %c0_i32_0 = arith.constant 0 : i32
    %c0_i32_1 = arith.constant 0 : i32
    return %c0_i32, %c0_i32_0 : i32, i32
  }
  func.func @transform_5(%arg0: i32) -> (i32, i32) {
    %c0_i32 = arith.constant 0 : i32
    %c0_i32_0 = arith.constant 0 : i32
    return %arg0, %c0_i32 : i32, i32
  }
}

</mosaic_0001>

<bundles_post_ra>
// kernel: tpu_custom_call.1
= control target key start
LH: loop header
LB: loop body
LE: loop exit
PB: predicated region body
PF: predicated region fallthrough
CT: control target
= control target key end

     0   :  { %s515_s0 = inlined_call_operand.hbm [shape: f32[8,128], index: 0, kind: input, shape index: {}]   ;;  %s516_s1 = inlined_call_operand.hbm [shape: f32[2,128,128], index: 1, kind: input, shape index: {}]   ;;  %s517_s2 = inlined_call_operand.vmem [shape: f32[2,1,128], index: 2, kind: input, shape index: {}]   ;;  %s518_s3 = inlined_call_operand.vmem [shape: f32[1,128], index: 3, kind: input, shape index: {}]   ;;  %s519_s4 = inlined_call_operand.<no memory space> [shape: f32[1,1], index: 4, kind: input, shape index: {}]   ;;  %s520_s5 = inlined_call_operand.vmem [shape: f32[8,1], index: 5, kind: output, shape index: {}]  }
   0x1   :  { %v10_v0 = vstv %s519_s4 }
   0x2   :  { %11 = vst [vmem:[#allocation2] sm:$0x1] %v10_v0 }
   0x3   :  { %12 = vsyncpa [#allocation4], 0 }
   0x4   :  { %13 = vsyncpa [#allocation6], 0  ;;  %s424_s20 = smov [#allocation3]   ;;  %s425_s22 = smov [#allocation5]  }
   0x5   :  { %s20_s21 = sshll.u32 %s424_s20, 4  ;;  %s29_s23 = sshll.u32 %s425_s22, 4  ;;  %s21_s21 = int_to_ptr.vmem [resolvable:$true] %s20_s21  ;;  %s30_s23 = int_to_ptr.vmem [resolvable:$true] %s29_s23 }
   0x6   :  { %s388_s24 = scalar_lea.vmem %s21_s21, 128  ;;  %p393_p1 = scmp.lt.s32.totalorder %s21_s21, %s21_s21 }
   0x7   :  { %p389_p0 = scmp.ne.s32.totalorder %s21_s21, %s388_s24  ;;  %p394_p2 = scmp.lt.s32.totalorder %s388_s24, %s388_s24 }
   0x9   :  { %p395_p3 = por %p394_p2, %p393_p1 }
   0xb   :  { %p396_p4 = pnand %p395_p3, %p389_p0 }
   0xd   :  { %399 = shalt.err (!%p396_p4)
}
   0xe   :  { %23 = dma.hbm_to_vmem [thread:$0]  %s515_s0, 128, %s21_s21, [#allocation4]  }
   0xf   :  { %s408_s4 = scalar_lea.vmem %s30_s23, 4096  ;;  %p413_p6 = scmp.lt.s32.totalorder %s30_s23, %s30_s23 }
  0x10   :  { %p409_p5 = scmp.ne.s32.totalorder %s30_s23, %s408_s4  ;;  %p414_p7 = scmp.lt.s32.totalorder %s408_s4, %s408_s4 }
  0x12   :  { %p415_p8 = por %p414_p7, %p413_p6 }
  0x14   :  { %p416_p9 = pnand %p415_p8, %p409_p5 }
  0x16   :  { %419 = shalt.err (!%p416_p9)
}
  0x17   :  { %s426_s27 = smov 128   ;;  %s427_s28 = smov 8  }
  0x18   :  { %35 = dma.hbm_to_vmem [thread:$0]  %s516_s1, 4096, %s30_s23, [#allocation6], %s426_s27, %s426_s27, %s427_s28  }
  0x19   :  { %420 = dma.done.wait [#allocation4], 128  }
  0x1a   :  { %421 = vsyncadd [#allocation4], 4294967168 }
  0x1b   :  { %422 = dma.done.wait [#allocation6], 4096  }
  0x1c   :  { %423 = vsyncadd [#allocation6], 4294963200  ;;  %v428_v1 = vmov 0.0   ;;  %vm429_vm0 = vmmov 0   ;;  %v64_v2 = vld [vmem:[#allocation5 + $0x78] sm:$0xff]  ;;  %v63_v3 = vld [vmem:[#allocation5 + $0x70] sm:$0xff] }
  0x1d   :  { %304 = vmatprep.subr.mxu0 %v428_v1  ;;  %336 = vmatprep.mubr.msk.f32.mxu0 %vm429_vm0, %v428_v1  ;;  %v62_v4 = vld [vmem:[#allocation5 + $0x68] sm:$0xff]  ;;  %v61_v5 = vld [vmem:[#allocation5 + $0x60] sm:$0xff]  ;;  %v159_v6 = vld [vmem:[#allocation5 + $0xf8] sm:$0xff]  ;;  %vm257_vm1 = vcmask 7168  }
  0x1e   :  { %339 = vmatprep.subr.mxu1 %v428_v1  ;;  %371 = vmatprep.mubr.msk.f32.mxu1 %vm429_vm0, %v428_v1  ;;  %v60_v7 = vld [vmem:[#allocation5 + $0x58] sm:$0xff]  ;;  %v158_v8 = vld [vmem:[#allocation5 + $0xf0] sm:$0xff]  ;;  %v157_v9 = vld [vmem:[#allocation5 + $0xe8] sm:$0xff] }
  0x1f   :  { %305 = vmatpush3.msra.mxu0 %v64_v2  ;;  %340 = vmatpush3.msra.mxu1 %v159_v6  ;;  %v59_v10 = vld [vmem:[#allocation5 + $0x50] sm:$0xff]  ;;  %v156_v11 = vld [vmem:[#allocation5 + $0xe0] sm:$0xff]  ;;  %v58_v12 = vld [vmem:[#allocation5 + $0x48] sm:$0xff] }
  0x20   :  { %306 = vmatprep.subr.mxu0 %v428_v1  ;;  %341 = vmatprep.subr.mxu1 %v428_v1  ;;  %v155_v13 = vld [vmem:[#allocation5 + $0xd8] sm:$0xff]  ;;  %v57_v14 = vld [vmem:[#allocation5 + $0x40] sm:$0xff]  ;;  %v154_v15 = vld [vmem:[#allocation5 + $0xd0] sm:$0xff] }
  0x21   :  { %307 = vmatpush3.msra.mxu0 %v63_v3  ;;  %342 = vmatpush3.msra.mxu1 %v158_v8  ;;  %v56_v16 = vld [vmem:[#allocation5 + $0x38] sm:$0xff]  ;;  %v153_v17 = vld [vmem:[#allocation5 + $0xc8] sm:$0xff]  ;;  %v55_v18 = vld [vmem:[#allocation5 + $0x30] sm:$0xff] }
  0x22   :  { %308 = vmatprep.subr.mxu0 %v428_v1  ;;  %343 = vmatprep.subr.mxu1 %v428_v1  ;;  %v152_v19 = vld [vmem:[#allocation5 + $0xc0] sm:$0xff]  ;;  %v54_v20 = vld [vmem:[#allocation5 + $0x28] sm:$0xff]  ;;  %v151_v21 = vld [vmem:[#allocation5 + $0xb8] sm:$0xff] }
  0x23   :  { %309 = vmatpush3.msra.mxu0 %v62_v4  ;;  %344 = vmatpush3.msra.mxu1 %v157_v9  ;;  %v53_v22 = vld [vmem:[#allocation5 + $0x20] sm:$0xff]  ;;  %v150_v23 = vld [vmem:[#allocation5 + $0xb0] sm:$0xff]  ;;  %v52_v24 = vld [vmem:[#allocation5 + $0x18] sm:$0xff] }
  0x24   :  { %310 = vmatprep.subr.mxu0 %v428_v1  ;;  %345 = vmatprep.subr.mxu1 %v428_v1  ;;  %v149_v25 = vld [vmem:[#allocation5 + $0xa8] sm:$0xff]  ;;  %v51_v26 = vld [vmem:[#allocation5 + $0x10] sm:$0xff]  ;;  %v148_v27 = vld [vmem:[#allocation5 + $0xa0] sm:$0xff] }
  0x25   :  { %311 = vmatpush3.msra.mxu0 %v61_v5  ;;  %346 = vmatpush3.msra.mxu1 %v156_v11  ;;  %v50_v28 = vld [vmem:[#allocation5 + $0x8] sm:$0xff]  ;;  %v147_v29 = vld [vmem:[#allocation5 + $0x98] sm:$0xff]  ;;  %v49_v30 = vld [vmem:[#allocation5] sm:$0xff] }
  0x26   :  { %312 = vmatprep.subr.mxu0 %v428_v1  ;;  %347 = vmatprep.subr.mxu1 %v428_v1  ;;  %v48_v31 = vld [vmem:[#allocation3] sm:$0xff]  ;;  %v146_v32 = vld [vmem:[#allocation5 + $0x90] sm:$0xff]  ;;  %v145_v33 = vld [vmem:[#allocation5 + $0x88] sm:$0xff] }
  0x27   :  { %313 = vmatpush3.msra.mxu0 %v60_v7  ;;  %348 = vmatpush3.msra.mxu1 %v155_v13  ;;  %v144_v34 = vld [vmem:[#allocation5 + $0x80] sm:$0xff]  ;;  %v265_v35 = vld [vmem:[%s517_s2] ss:$0 sm:$0xff]  ;;  %v267_v40 = vld [vmem:[%s517_s2 + $0x1] ss:$0 sm:$0xff] }
  0x28   :  { %314 = vmatprep.subr.mxu0 %v428_v1  ;;  %349 = vmatprep.subr.mxu1 %v428_v1  ;;  %v268_v44 = vld [vmem:[%s518_s3] ss:$0 sm:$0xff] }
  0x29   :  { %315 = vmatpush3.msra.mxu0 %v59_v10  ;;  %350 = vmatpush3.msra.mxu1 %v154_v15  ;;  %v269_v47 = vld [vmem:[#allocation2] ss:$0 sm:$0xff] }
  0x2a   :  { %316 = vmatprep.subr.mxu0 %v428_v1  ;;  %351 = vmatprep.subr.mxu1 %v428_v1 }
  0x2b   :  { %317 = vmatpush3.msra.mxu0 %v58_v12  ;;  %352 = vmatpush3.msra.mxu1 %v153_v17 }
  0x2c   :  { %318 = vmatprep.subr.mxu0 %v428_v1  ;;  %353 = vmatprep.subr.mxu1 %v428_v1 }
  0x2d   :  { %319 = vmatpush3.msra.mxu0 %v57_v14  ;;  %354 = vmatpush3.msra.mxu1 %v152_v19 }
  0x2e   :  { %320 = vmatprep.subr.mxu0 %v428_v1  ;;  %355 = vmatprep.subr.mxu1 %v428_v1 }
  0x2f   :  { %321 = vmatpush3.msra.mxu0 %v56_v16  ;;  %356 = vmatpush3.msra.mxu1 %v151_v21 }
  0x30   :  { %322 = vmatprep.subr.mxu0 %v428_v1  ;;  %357 = vmatprep.subr.mxu1 %v428_v1 }
  0x31   :  { %323 = vmatpush3.msra.mxu0 %v55_v18  ;;  %358 = vmatpush3.msra.mxu1 %v150_v23 }
  0x32   :  { %324 = vmatprep.subr.mxu0 %v428_v1  ;;  %359 = vmatprep.subr.mxu1 %v428_v1 }
  0x33   :  { %325 = vmatpush3.msra.mxu0 %v54_v20  ;;  %360 = vmatpush3.msra.mxu1 %v149_v25 }
  0x34   :  { %326 = vmatprep.subr.mxu0 %v428_v1  ;;  %361 = vmatprep.subr.mxu1 %v428_v1 }
  0x35   :  { %327 = vmatpush3.msra.mxu0 %v53_v22  ;;  %362 = vmatpush3.msra.mxu1 %v148_v27 }
  0x36   :  { %328 = vmatprep.subr.mxu0 %v428_v1  ;;  %363 = vmatprep.subr.mxu1 %v428_v1 }
  0x37   :  { %329 = vmatpush3.msra.mxu0 %v52_v24  ;;  %364 = vmatpush3.msra.mxu1 %v147_v29 }
  0x38   :  { %330 = vmatprep.subr.mxu0 %v428_v1  ;;  %365 = vmatprep.subr.mxu1 %v428_v1 }
  0x39   :  { %331 = vmatpush3.msra.mxu0 %v51_v26  ;;  %366 = vmatpush3.msra.mxu1 %v146_v32 }
  0x3a   :  { %332 = vmatprep.subr.mxu0 %v428_v1  ;;  %367 = vmatprep.subr.mxu1 %v428_v1 }
  0x3b   :  { %333 = vmatpush3.msra.mxu0 %v50_v28  ;;  %368 = vmatpush3.msra.mxu1 %v145_v33 }
  0x3c   :  { %334 = vmatprep.subr.mxu0 %v428_v1  ;;  %369 = vmatprep.subr.mxu1 %v428_v1 }
  0x3d   :  { %335 = vmatpush3.msra.mxu0 %v49_v30  ;;  %370 = vmatpush3.msra.mxu1 %v144_v34 }
  0x3e   :  { %337 = vmatmul.mubr.f32.vlgmr.msra.gmra.mxu0 %v48_v31 }
  0xfe   :  { %v138_v36 = vpop.f32.mrf.mxu0 }
  0xff   :  { %v139_v37 = vadd.f32 %v265_v35, %v138_v36 }
 0x100   :  { %v338_v38 = vpop.f32.mrf.mxu0 }
 0x101   :  { %v142_v39 = vmax.f32 %v139_v37, 0.0 }
 0x103   :  { %372 = vmatmul.mubr.f32.vlgmr.msra.gmra.mxu1 %v142_v39 }
 0x1c3   :  { %v234_v41 = vpop.f32.mrf.mxu1 }
 0x1c4   :  { %v235_v42 = vadd.f32 %v267_v40, %v234_v41 }
 0x1c5   :  { %v373_v43 = vpop.f32.mrf.mxu1 }
 0x1c6   :  { %v238_v45 = vmax.f32 %v235_v42, 0.0 }
 0x1c8   :  { %v246_v46 = vmul.f32 %v268_v44, %v238_v45 }
 0x1ca   :  { %247 = vadd.xlane.f32.xlu0 %v246_v46 }
 0x253   :  { %v248_v48 = vpop.xlane.xlu0 %247 }
 0x254   :  { %v256_v49 = vadd.f32 %v269_v47, %v248_v48 }
 0x256   :  { %258 = vst.msk [vmem:[%s520_s5] sm:$0xff] %vm257_vm1, %v256_v49 }
 0x257   :  { %263 = vsyncpa [#allocation4], 1 }
 0x258   :  { %264 = vsyncpa [#allocation6], 1 }

</bundles_post_ra>
